<compile_context>
chip_gen: v6e
topology: v6e:2x2x1
jax: 0.10.0
libtpu: 0.0.40
codegen_flags: <defaults>
</compile_context>

<pallas_src>
import jax
import jax.numpy as jnp
from jax.experimental import pallas as pl
from jax.experimental.pallas import tpu as pltpu

T, D      = 16, 128        # regions / region feature dim (T*D = 2048)
QDIM      = 32             # question embedding dim
HID       = 64             # q_net / v_net hidden dim (logical)
NCLS      = 16             # classifier output classes (logical)
HID_PAD   = 128            # hidden dim padded to one full vreg lane width
NCLS_PAD  = 128            # output dim padded to one full vreg lane width
TM_MAX    = 512            # batch tile: 2*512*2048*4B = 8 MiB double-buffered
                           # -> safe inside v7x's 64 MiB VMEM / 32 MiB scoped


def basemodel_kernel(v2d_ref, q_ref,
                     wq_ref, bq_ref,       # q_net  (QDIM -> HID_PAD) + ReLU
                     wv_ref, bv_ref,       # v_net  (T*D -> HID_PAD) + ReLU
                     wc_ref, bc_ref,       # classifier (HID_PAD -> NCLS_PAD)
                     logits_ref):
    # TODO(synk): the PyTorch module also computes self.v_att(v, q) and an
    # attention-rescaling loop, but neither result reaches the output
    # (dead code), so it is intentionally not computed here.
    q_emb = jnp.maximum(
        jnp.dot(q_ref[...], wq_ref[...], preferred_element_type=jnp.float32)
        + bq_ref[...], 0.0)                                       # [TM, HID_PAD]
    v_emb = jnp.maximum(
        jnp.dot(v2d_ref[...], wv_ref[...], preferred_element_type=jnp.float32)
        + bv_ref[...], 0.0)                                       # [TM, HID_PAD]
    logits_ref[...] = (jnp.dot(q_emb * v_emb, wc_ref[...],
                               preferred_element_type=jnp.float32)
                       + bc_ref[...])                             # [TM, NCLS_PAD]


def _pad_params(p):
    """Pad logical weights to lane-dense (128-wide) shapes. Padded columns of
    wq/wv are zero with zero bias -> ReLU gives 0 there; padded rows/cols of
    wc are zero -> padded logits columns are exactly bc_pad (= 0)."""
    wq = jnp.zeros((QDIM, HID_PAD), jnp.float32).at[:, :HID].set(p["wq"])
    bq = jnp.zeros((1, HID_PAD), jnp.float32).at[:, :HID].set(p["bq"])
    wv = jnp.zeros((T * D, HID_PAD), jnp.float32).at[:, :HID].set(p["wv"])
    bv = jnp.zeros((1, HID_PAD), jnp.float32).at[:, :HID].set(p["bv"])
    wc = jnp.zeros((HID_PAD, NCLS_PAD), jnp.float32).at[:HID, :NCLS].set(p["wc"])
    bc = jnp.zeros((1, NCLS_PAD), jnp.float32).at[:, :NCLS].set(p["bc"])
    return wq, bq, wv, bv, wc, bc


def base_model_forward(v, q, params):
    """v: [B, T, D] (or reshapeable to [B, 16, 128]);  q: [B, QDIM]."""
    B = v.shape[0]
    v2d = v.reshape(B, T * D)          # the ONLY copy of v passed to the kernel

    # Batch tiling: full batch if small, else 512-row tiles (pad B if needed).
    if B <= TM_MAX:
        TM, Bp = B, B
    else:
        TM = TM_MAX
        Bp = pl.cdiv(B, TM) * TM
        if Bp != B:
            v2d = jnp.pad(v2d, ((0, Bp - B), (0, 0)))
            q   = jnp.pad(q,   ((0, Bp - B), (0, 0)))
    grid = (Bp // TM,)

    wq, bq, wv, bv, wc, bc = _pad_params(params)

    def const(shape):  # weights/biases stay VMEM-resident across grid steps
        return pl.BlockSpec(shape, lambda i: (0, 0))

    logits_pad = pl.pallas_call(
        basemodel_kernel,
        out_shape=jax.ShapeDtypeStruct((Bp, NCLS_PAD), jnp.float32),
        grid=grid,
        in_specs=[
            pl.BlockSpec((TM, T * D), lambda i: (i, 0)),   # v2d tile
            pl.BlockSpec((TM, QDIM),  lambda i: (i, 0)),   # q tile
            const((QDIM, HID_PAD)),  const((1, HID_PAD)),  # wq, bq
            const((T * D, HID_PAD)), const((1, HID_PAD)),  # wv, bv
            const((HID_PAD, NCLS_PAD)), const((1, NCLS_PAD)),  # wc, bc
        ],
        out_specs=pl.BlockSpec((TM, NCLS_PAD), lambda i: (i, 0)),
        compiler_params=pltpu.CompilerParams(
            dimension_semantics=("parallel",)),   # megacore sharding on v7x
    )(v2d, q, wq, bq, wv, bv, wc, bc)

    return logits_pad[:B, :NCLS]       # strip batch + lane padding


def init_params(key):
    ks = jax.random.split(key, 3)

    def w(k, shape, fan_in):
        return jax.random.normal(k, shape, jnp.float32) / jnp.sqrt(float(fan_in))

    return dict(
        # q_net: Linear(QDIM -> HID) + ReLU
        wq=w(ks[0], (QDIM, HID), QDIM),
        bq=jnp.zeros((1, HID), jnp.float32),
        # v_net: Linear(T*D -> HID) + ReLU
        wv=w(ks[1], (T * D, HID), T * D),
        bv=jnp.zeros((1, HID), jnp.float32),
        # classifier: Linear(HID -> NCLS)
        wc=w(ks[2], (HID, NCLS), HID),
        bc=jnp.zeros((1, NCLS), jnp.float32),
    )


def _reference(v, q, p):
    """Pure-JAX reference of the logits path (attention is dead code)."""
    B = v.shape[0]
    q_emb = jnp.maximum(q @ p["wq"] + p["bq"], 0.0)
    v_emb = jnp.maximum(v.reshape(B, T * D) @ p["wv"] + p["bv"], 0.0)
    return (q_emb * v_emb) @ p["wc"] + p["bc"]


if __name__ == "__main__":
    key = jax.random.PRNGKey(0)
    kv, kq, kp = jax.random.split(key, 3)
    B = 2
    v = jax.random.normal(kv, (B, T, D), jnp.float32)   # [2, 16, 128]
    q = jax.random.normal(kq, (B, QDIM), jnp.float32)   # [2, 32]
    params = init_params(kp)

    logits = base_model_forward(v, q, params)
    jax.block_until_ready(logits)

    assert logits.shape == (B, NCLS)
    assert jnp.allclose(logits, _reference(v, q, params), atol=1e-4, rtol=1e-4)
    print("KERNEL_OK")
</pallas_src>

<mosaic_0001>
module attributes {stable_mosaic.version = 11 : i64} {
  func.func @basemodel_kernel(%arg0: i32, %arg1: memref<2x2048xf32, #tpu.memory_space<vmem>>, %arg2: memref<2x32xf32, #tpu.memory_space<vmem>>, %arg3: memref<32x128xf32, #tpu.memory_space<vmem>>, %arg4: memref<1x128xf32, #tpu.memory_space<vmem>>, %arg5: memref<2048x128xf32, #tpu.memory_space<vmem>>, %arg6: memref<1x128xf32, #tpu.memory_space<vmem>>, %arg7: memref<128x128xf32, #tpu.memory_space<vmem>>, %arg8: memref<1x128xf32, #tpu.memory_space<vmem>>, %arg9: memref<2x128xf32, #tpu.memory_space<vmem>>) attributes {dimension_semantics = [#tpu.dimension_semantics<parallel>], iteration_bounds = array<i64: 1>, scalar_prefetch = 0 : i64, scratch_operands = 0 : i64, tpu.core_type = #tpu.core_type<tc>, window_params = [{transform_indices = @transform_0, window_bounds = array<i64: 2, 2048>}, {transform_indices = @transform_1, window_bounds = array<i64: 2, 32>}, {pipeline_mode = #tpu.pipeline_mode<synchronous>, transform_indices = @transform_2, window_bounds = array<i64: 32, 128>}, {pipeline_mode = #tpu.pipeline_mode<synchronous>, transform_indices = @transform_3, window_bounds = array<i64: 1, 128>}, {pipeline_mode = #tpu.pipeline_mode<synchronous>, transform_indices = @transform_4, window_bounds = array<i64: 2048, 128>}, {pipeline_mode = #tpu.pipeline_mode<synchronous>, transform_indices = @transform_5, window_bounds = array<i64: 1, 128>}, {pipeline_mode = #tpu.pipeline_mode<synchronous>, transform_indices = @transform_6, window_bounds = array<i64: 128, 128>}, {pipeline_mode = #tpu.pipeline_mode<synchronous>, transform_indices = @transform_7, window_bounds = array<i64: 1, 128>}, {transform_indices = @transform_8, window_bounds = array<i64: 2, 128>}]} {
    %c0 = arith.constant 0 : index
    %c0_0 = arith.constant 0 : index
    %0 = vector.load %arg2[%c0, %c0_0] : memref<2x32xf32, #tpu.memory_space<vmem>>, vector<2x32xf32>
    %c0_1 = arith.constant 0 : index
    %c0_2 = arith.constant 0 : index
    %1 = vector.load %arg3[%c0_1, %c0_2] : memref<32x128xf32, #tpu.memory_space<vmem>>, vector<32x128xf32>
    %cst = arith.constant dense<0.000000e+00> : vector<2x128xf32>
    %2 = tpu.matmul %0, %1, %cst {dimension_numbers = #tpu.dot_dimension_numbers<[1], [0], [0], [1], [0, 0, 1, 1], [], []>} : vector<2x32xf32>, vector<32x128xf32>, vector<2x128xf32> -> vector<2x128xf32>
    %c0_3 = arith.constant 0 : index
    %c0_4 = arith.constant 0 : index
    %3 = vector.load %arg4[%c0_3, %c0_4] : memref<1x128xf32, #tpu.memory_space<vmem>>, vector<1x128xf32>
    %4 = vector.broadcast %3 : vector<1x128xf32> to vector<2x128xf32>
    %5 = arith.addf %2, %4 : vector<2x128xf32>
    %cst_5 = arith.constant 0.000000e+00 : f32
    %6 = vector.broadcast %cst_5 : f32 to vector<2x128xf32>
    %7 = arith.maximumf %5, %6 : vector<2x128xf32>
    %c0_6 = arith.constant 0 : index
    %c0_7 = arith.constant 0 : index
    %8 = vector.load %arg1[%c0_6, %c0_7] : memref<2x2048xf32, #tpu.memory_space<vmem>>, vector<2x2048xf32>
    %c0_8 = arith.constant 0 : index
    %c0_9 = arith.constant 0 : index
    %9 = vector.load %arg5[%c0_8, %c0_9] : memref<2048x128xf32, #tpu.memory_space<vmem>>, vector<2048x128xf32>
    %cst_10 = arith.constant dense<0.000000e+00> : vector<2x128xf32>
    %10 = tpu.matmul %8, %9, %cst_10 {dimension_numbers = #tpu.dot_dimension_numbers<[1], [0], [0], [1], [0, 0, 1, 1], [], []>} : vector<2x2048xf32>, vector<2048x128xf32>, vector<2x128xf32> -> vector<2x128xf32>
    %c0_11 = arith.constant 0 : index
    %c0_12 = arith.constant 0 : index
    %11 = vector.load %arg6[%c0_11, %c0_12] : memref<1x128xf32, #tpu.memory_space<vmem>>, vector<1x128xf32>
    %12 = vector.broadcast %11 : vector<1x128xf32> to vector<2x128xf32>
    %13 = arith.addf %10, %12 : vector<2x128xf32>
    %cst_13 = arith.constant 0.000000e+00 : f32
    %14 = vector.broadcast %cst_13 : f32 to vector<2x128xf32>
    %15 = arith.maximumf %13, %14 : vector<2x128xf32>
    %16 = arith.mulf %7, %15 : vector<2x128xf32>
    %c0_14 = arith.constant 0 : index
    %c0_15 = arith.constant 0 : index
    %17 = vector.load %arg7[%c0_14, %c0_15] : memref<128x128xf32, #tpu.memory_space<vmem>>, vector<128x128xf32>
    %cst_16 = arith.constant dense<0.000000e+00> : vector<2x128xf32>
    %18 = tpu.matmul %16, %17, %cst_16 {dimension_numbers = #tpu.dot_dimension_numbers<[1], [0], [0], [1], [0, 0, 1, 1], [], []>} : vector<2x128xf32>, vector<128x128xf32>, vector<2x128xf32> -> vector<2x128xf32>
    %c0_17 = arith.constant 0 : index
    %c0_18 = arith.constant 0 : index
    %19 = vector.load %arg8[%c0_17, %c0_18] : memref<1x128xf32, #tpu.memory_space<vmem>>, vector<1x128xf32>
    %20 = vector.broadcast %19 : vector<1x128xf32> to vector<2x128xf32>
    %21 = arith.addf %18, %20 : vector<2x128xf32>
    %c0_19 = arith.constant 0 : index
    %c0_20 = arith.constant 0 : index
    %22 = vector.load %arg9[%c0_19, %c0_20] : memref<2x128xf32, #tpu.memory_space<vmem>>, vector<2x128xf32>
    tpu.vector_store %arg9[%c0_19, %c0_20], %21 {strides = array<i32>} : memref<2x128xf32, #tpu.memory_space<vmem>>, vector<2x128xf32>,
    return
  }
  func.func @transform_0(%arg0: i32) -> (i32, i32) {
    %c0_i32 = arith.constant 0 : i32
    %c0_i32_0 = arith.constant 0 : i32
    return %arg0, %c0_i32 : i32, i32
  }
  func.func @transform_1(%arg0: i32) -> (i32, i32) {
    %c0_i32 = arith.constant 0 : i32
    %c0_i32_0 = arith.constant 0 : i32
    return %arg0, %c0_i32 : i32, i32
  }
  func.func @transform_2(%arg0: i32) -> (i32, i32) {
    %c0_i32 = arith.constant 0 : i32
    %c0_i32_0 = arith.constant 0 : i32
    %c0_i32_1 = arith.constant 0 : i32
    return %c0_i32, %c0_i32_0 : i32, i32
  }
  func.func @transform_3(%arg0: i32) -> (i32, i32) {
    %c0_i32 = arith.constant 0 : i32
    %c0_i32_0 = arith.constant 0 : i32
    %c0_i32_1 = arith.constant 0 : i32
    return %c0_i32, %c0_i32_0 : i32, i32
  }
  func.func @transform_4(%arg0: i32) -> (i32, i32) {
    %c0_i32 = arith.constant 0 : i32
    %c0_i32_0 = arith.constant 0 : i32
    %c0_i32_1 = arith.constant 0 : i32
    return %c0_i32, %c0_i32_0 : i32, i32
  }
  func.func @transform_5(%arg0: i32) -> (i32, i32) {
    %c0_i32 = arith.constant 0 : i32
    %c0_i32_0 = arith.constant 0 : i32
    %c0_i32_1 = arith.constant 0 : i32
    return %c0_i32, %c0_i32_0 : i32, i32
  }
  func.func @transform_6(%arg0: i32) -> (i32, i32) {
    %c0_i32 = arith.constant 0 : i32
    %c0_i32_0 = arith.constant 0 : i32
    %c0_i32_1 = arith.constant 0 : i32
    return %c0_i32, %c0_i32_0 : i32, i32
  }
  func.func @transform_7(%arg0: i32) -> (i32, i32) {
    %c0_i32 = arith.constant 0 : i32
    %c0_i32_0 = arith.constant 0 : i32
    %c0_i32_1 = arith.constant 0 : i32
    return %c0_i32, %c0_i32_0 : i32, i32
  }
  func.func @transform_8(%arg0: i32) -> (i32, i32) {
    %c0_i32 = arith.constant 0 : i32
    %c0_i32_0 = arith.constant 0 : i32
    return %arg0, %c0_i32 : i32, i32
  }
}

</mosaic_0001>

<bundles_post_ra>
// kernel: tpu_custom_call.1
= control target key start
LH: loop header
LB: loop body
LE: loop exit
PB: predicated region body
PF: predicated region fallthrough
CT: control target
= control target key end

     0   :  { %13 = vsyncpa [#allocation3], 0  ;;  %s1830_s0 = inlined_call_operand.hbm [shape: f32[2,2048], index: 0, kind: input, shape index: {}]   ;;  %s1831_s1 = inlined_call_operand.hbm [shape: f32[2,32], index: 1, kind: input, shape index: {}]   ;;  %s1832_s2 = inlined_call_operand.hbm [shape: f32[32,128], index: 2, kind: input, shape index: {}]   ;;  %s1833_s3 = inlined_call_operand.vmem [shape: f32[1,128], index: 3, kind: input, shape index: {}]   ;;  %s1834_s4 = inlined_call_operand.hbm [shape: f32[2048,128], index: 4, kind: input, shape index: {}]   ;;  %s1835_s5 = inlined_call_operand.vmem [shape: f32[1,128], index: 5, kind: input, shape index: {}]   ;;  %s1836_s6 = inlined_call_operand.hbm [shape: f32[128,128], index: 6, kind: input, shape index: {}]   ;;  %s1837_s7 = inlined_call_operand.vmem [shape: f32[1,128], index: 7, kind: input, shape index: {}]   ;;  %s1838_s8 = inlined_call_operand.hbm [shape: f32[2,128], index: 8, kind: output, shape index: {}]  }
   0x1   :  { %14 = vsyncpa [#allocation6], 0 }
   0x2   :  { %15 = vsyncpa [#allocation9], 0 }
   0x3   :  { %16 = vsyncpa [#allocation4], 0  ;;  %s1704_s27 = smov [#allocation5]  }
   0x4   :  { %s33_s28 = sshll.u32 %s1704_s27, 4  ;;  %s34_s28 = int_to_ptr.vmem [resolvable:$true] %s33_s28 }
   0x5   :  { %s1584_s29 = scalar_lea.vmem %s34_s28, 32  ;;  %p1589_p1 = scmp.lt.s32.totalorder %s34_s28, %s34_s28 }
   0x6   :  { %p1585_p0 = scmp.ne.s32.totalorder %s34_s28, %s1584_s29  ;;  %p1590_p2 = scmp.lt.s32.totalorder %s1584_s29, %s1584_s29 }
   0x8   :  { %p1591_p3 = por %p1590_p2, %p1589_p1 }
   0xa   :  { %p1592_p4 = pnand %p1591_p3, %p1585_p0 }
   0xc   :  { %1595 = shalt.err (!%p1592_p4)
}
   0xd   :  { %36 = dma.hbm_to_vmem [thread:$0]  %s1831_s1, 32, %s34_s28, [#allocation6]  }
   0xe   :  { %s1705_s10 = smov [#allocation8]   ;;  %s1706_s12 = smov [#allocation2]  }
   0xf   :  { %s56_s11 = sshll.u32 %s1705_s10, 4  ;;  %s23_s13 = sshll.u32 %s1706_s12, 4  ;;  %s57_s11 = int_to_ptr.vmem [resolvable:$true] %s56_s11  ;;  %s24_s13 = int_to_ptr.vmem [resolvable:$true] %s23_s13 }
  0x10   :  { %s1604_s14 = scalar_lea.vmem %s57_s11, 32768  ;;  %p1609_p6 = scmp.lt.s32.totalorder %s57_s11, %s57_s11 }
  0x11   :  { %p1605_p5 = scmp.ne.s32.totalorder %s57_s11, %s1604_s14  ;;  %p1610_p7 = scmp.lt.s32.totalorder %s1604_s14, %s1604_s14 }
  0x13   :  { %p1611_p8 = por %p1610_p7, %p1609_p6 }
  0x15   :  { %p1612_p9 = pnand %p1611_p8, %p1605_p5 }
  0x17   :  { %1615 = shalt.err (!%p1612_p9)
}
  0x18   :  { %s1707_s15 = smov 128   ;;  %s1708_s16 = smov 8  }
  0x19   :  { %62 = dma.hbm_to_vmem [thread:$0]  %s1834_s4, 32768, %s57_s11, [#allocation9], %s1707_s15, %s1707_s15, %s1708_s16  }
  0x1a   :  { %s1624_s1 = scalar_lea.vmem %s24_s13, 512  ;;  %p1629_p11 = scmp.lt.s32.totalorder %s24_s13, %s24_s13 }
  0x1b   :  { %p1625_p10 = scmp.ne.s32.totalorder %s24_s13, %s1624_s1  ;;  %p1630_p12 = scmp.lt.s32.totalorder %s1624_s1, %s1624_s1 }
  0x1d   :  { %p1631_p13 = por %p1630_p12, %p1629_p11 }
  0x1f   :  { %p1632_p0 = pnand %p1631_p13, %p1625_p10 }
  0x21   :  { %1635 = shalt.err (!%p1632_p0)
}
  0x22   :  { %26 = dma.hbm_to_vmem [thread:$0]  %s1830_s0, 512, %s24_s13, [#allocation3]  }
  0x23   :  { %s1709_s21 = smov [#allocation7]   ;;  %s1710_s23 = smov [#allocation10]  }
  0x24   :  { %s42_s22 = sshll.u32 %s1709_s21, 4  ;;  %s70_s24 = sshll.u32 %s1710_s23, 4  ;;  %s43_s22 = int_to_ptr.vmem [resolvable:$true] %s42_s22  ;;  %s71_s24 = int_to_ptr.vmem [resolvable:$true] %s70_s24 }
  0x25   :  { %s1644_s25 = scalar_lea.vmem %s43_s22, 512  ;;  %p1649_p2 = scmp.lt.s32.totalorder %s43_s22, %s43_s22 }
  0x26   :  { %p1645_p1 = scmp.ne.s32.totalorder %s43_s22, %s1644_s25  ;;  %p1650_p3 = scmp.lt.s32.totalorder %s1644_s25, %s1644_s25 }
  0x28   :  { %p1651_p4 = por %p1650_p3, %p1649_p2 }
  0x2a   :  { %p1652_p5 = pnand %p1651_p4, %p1645_p1 }
  0x2c   :  { %1655 = shalt.err (!%p1652_p5)
}
  0x2d   :  { %48 = dma.hbm_to_vmem [thread:$0]  %s1832_s2, 512, %s43_s22, [#allocation6], %s1707_s15, %s1707_s15, %s1708_s16  }
  0x2e   :  { %s1664_s0 = scalar_lea.vmem %s71_s24, 2048  ;;  %p1669_p7 = scmp.lt.s32.totalorder %s71_s24, %s71_s24 }
  0x2f   :  { %p1665_p6 = scmp.ne.s32.totalorder %s71_s24, %s1664_s0  ;;  %p1670_p8 = scmp.lt.s32.totalorder %s1664_s0, %s1664_s0 }
  0x31   :  { %p1671_p9 = por %p1670_p8, %p1669_p7 }
  0x33   :  { %p1672_p10 = pnand %p1671_p9, %p1665_p6 }
  0x35   :  { %1675 = shalt.err (!%p1672_p10)
}
  0x36   :  { %76 = dma.hbm_to_vmem [thread:$0]  %s1836_s6, 2048, %s71_s24, [#allocation9], %s1707_s15, %s1707_s15, %s1708_s16  }
  0x37   :  { %1696 = dma.done.wait [#allocation3], 512  }
  0x38   :  { %1697 = vsyncadd [#allocation3], 4294966784 }
  0x39   :  { %1698 = dma.done.wait [#allocation6], 544  }
  0x3a   :  { %1699 = vsyncadd [#allocation6], 4294966752 }
  0x3b   :  { %1700 = dma.done.wait [#allocation9], 34816  }
  0x3c   :  { %1701 = vsyncadd [#allocation9], 4294932480  ;;  %v1711_v0 = vmov 0.0   ;;  %vm1712_vm0 = vmmov 0   ;;  %v98_v1 = vld [vmem:[#allocation7 + $0x18] sm:$0xff]  ;;  %v97_v4 = vld [vmem:[#allocation7 + $0x10] sm:$0xff]  ;;  %v456_v32 = vlaneseq }
  0x3d   :  { %1515 = vmatprep.subr.mxu0 %v1711_v0  ;;  %1523 = vmatprep.mubr.msk.f32.mxu0 %vm1712_vm0, %v1711_v0  ;;  %v216_v2 = vld [vmem:[#allocation8 + $0xf8] sm:$0xff]  ;;  %v215_v5 = vld [vmem:[#allocation8 + $0xf0] sm:$0xff]  ;;  %v96_v7 = vld [vmem:[#allocation7 + $0x8] sm:$0xff]  ;;  %vm106_vm1 = vcmask 261120   ;;  %v1713_v30 = vmov 1983009808  }
  0x3e   :  { %v200_v3 = vld [vmem:[#allocation8 + $0x78] sm:$0xff]  ;;  %1516 = vmatpush3.msra.mxu0 %v98_v1  ;;  %1218 = vmatprep.subr.mxu1 %v216_v2  ;;  %v199_v6 = vld [vmem:[#allocation8 + $0x70] sm:$0xff]  ;;  %v214_v8 = vld [vmem:[#allocation8 + $0xe8] sm:$0xff]  ;;  %v454_v31 = vunpack.c.l.s4 %v1713_v30  ;;  %v457_v42 = vshrl.u32 %v456_v32, 7  ;;  %s1714_s10 = smov [#allocation11]  }
  0x3f   :  { %1517 = vmatprep.subr.mxu0 %v1711_v0  ;;  %1219 = vmatpush3.msra.mxu1 %v200_v3  ;;  %v198_v9 = vld [vmem:[#allocation8 + $0x68] sm:$0xff]  ;;  %v95_v10 = vld [vmem:[#allocation7] sm:$0xff]  ;;  %v94_v12 = vld [vmem:[#allocation5] sm:$0x3]  ;;  %s1198_s11 = sshll.u32 %s1714_s10, 4  ;;  %s1199_s11 = int_to_ptr.vmem [resolvable:$true] %s1198_s11 }
  0x40   :  { %1518 = vmatpush3.msra.mxu0 %v97_v4  ;;  %1220 = vmatprep.subr.mxu1 %v215_v5  ;;  %v213_v11 = vld [vmem:[#allocation8 + $0xe0] sm:$0xff]  ;;  %v248_v14 = vld [vmem:[#allocation8 + $0x1f8] sm:$0xff]  ;;  %v247_v18 = vld [vmem:[#allocation8 + $0x1f0] sm:$0xff]  ;;  %v455_v41 = vunpack.c.0.s8 %v454_v31  ;;  %p1681_p12 = scmp.lt.s32.totalorder %s1199_s11, %s1199_s11 }
  0x41   :  { %1519 = vmatprep.subr.mxu0 %v1711_v0  ;;  %1221 = vmatpush3.msra.mxu1 %v199_v6  ;;  %v197_v13 = vld [vmem:[#allocation8 + $0x60] sm:$0xff]  ;;  %v212_v15 = vld [vmem:[#allocation8 + $0xd8] sm:$0xff]  ;;  %v211_v19 = vld [vmem:[#allocation8 + $0xd0] sm:$0xff] }
  0x42   :  { %1520 = vmatpush3.msra.mxu0 %v96_v7  ;;  %1222 = vmatprep.subr.mxu1 %v214_v8  ;;  %v232_v16 = vld [vmem:[#allocation8 + $0x178] sm:$0xff]  ;;  %v231_v20 = vld [vmem:[#allocation8 + $0x170] sm:$0xff]  ;;  %v246_v22 = vld [vmem:[#allocation8 + $0x1e8] sm:$0xff]  ;;  %v1790_v51 = vsub.s32 %v455_v41, %v457_v42 }
  0x43   :  { %1521 = vmatprep.subr.mxu0 %v1711_v0  ;;  %1223 = vmatpush3.msra.mxu1 %v198_v9  ;;  %v196_v17 = vld [vmem:[#allocation8 + $0x58] sm:$0xff]  ;;  %v195_v21 = vld [vmem:[#allocation8 + $0x50] sm:$0xff]  ;;  %v210_v23 = vld [vmem:[#allocation8 + $0xc8] sm:$0xff] }
  0x44   :  { %1522 = vmatpush3.msra.mxu0 %v95_v10  ;;  %1224 = vmatprep.subr.mxu1 %v213_v11  ;;  %v230_v24 = vld [vmem:[#allocation8 + $0x168] sm:$0xff]  ;;  %v245_v26 = vld [vmem:[#allocation8 + $0x1e0] sm:$0xff]  ;;  %v244_v33 = vld [vmem:[#allocation8 + $0x1d8] sm:$0xff] }
  0x45   :  { %1524 = vmatmul.mubr.msk.f32.vlgmr.msra.gmra.mxu0 %vm106_vm1, %v94_v12  ;;  %1225 = vmatpush3.msra.mxu1 %v197_v13  ;;  %v194_v25 = vld [vmem:[#allocation8 + $0x48] sm:$0xff]  ;;  %v209_v27 = vld [vmem:[#allocation8 + $0xc0] sm:$0xff]  ;;  %v208_v34 = vld [vmem:[#allocation8 + $0xb8] sm:$0xff] }
  0x46   :  { %1253 = vmatprep.subr.mxu0 %v248_v14  ;;  %1226 = vmatprep.subr.mxu1 %v212_v15  ;;  %v229_v28 = vld [vmem:[#allocation8 + $0x160] sm:$0xff]  ;;  %v228_v35 = vld [vmem:[#allocation8 + $0x158] sm:$0xff]  ;;  %v243_v37 = vld [vmem:[#allocation8 + $0x1d0] sm:$0xff] }
  0x47   :  { %1254 = vmatpush3.msra.mxu0 %v232_v16  ;;  %1227 = vmatpush3.msra.mxu1 %v196_v17  ;;  %v193_v29 = vld [vmem:[#allocation8 + $0x40] sm:$0xff]  ;;  %v192_v36 = vld [vmem:[#allocation8 + $0x38] sm:$0xff]  ;;  %v207_v38 = vld [vmem:[#allocation8 + $0xb0] sm:$0xff] }
  0x48   :  { %1255 = vmatprep.subr.mxu0 %v247_v18  ;;  %1228 = vmatprep.subr.mxu1 %v211_v19  ;;  %v227_v39 = vld [vmem:[#allocation8 + $0x150] sm:$0xff]  ;;  %v242_v43 = vld [vmem:[#allocation8 + $0x1c8] sm:$0xff]  ;;  %v241_v47 = vld [vmem:[#allocation8 + $0x1c0] sm:$0xff] }
  0x49   :  { %1256 = vmatpush3.msra.mxu0 %v231_v20  ;;  %1229 = vmatpush3.msra.mxu1 %v195_v21  ;;  %v191_v40 = vld [vmem:[#allocation8 + $0x30] sm:$0xff]  ;;  %v206_v44 = vld [vmem:[#allocation8 + $0xa8] sm:$0xff]  ;;  %v205_v48 = vld [vmem:[#allocation8 + $0xa0] sm:$0xff] }
  0x4a   :  { %1257 = vmatprep.subr.mxu0 %v246_v22  ;;  %1230 = vmatprep.subr.mxu1 %v210_v23  ;;  %v226_v45 = vld [vmem:[#allocation8 + $0x148] sm:$0xff]  ;;  %v225_v49 = vld [vmem:[#allocation8 + $0x140] sm:$0xff]  ;;  %v240_v52 = vld [vmem:[#allocation8 + $0x1b8] sm:$0xff] }
  0x4b   :  { %1258 = vmatpush3.msra.mxu0 %v230_v24  ;;  %1231 = vmatpush3.msra.mxu1 %v194_v25  ;;  %v190_v46 = vld [vmem:[#allocation8 + $0x28] sm:$0xff]  ;;  %v189_v50 = vld [vmem:[#allocation8 + $0x20] sm:$0xff]  ;;  %v204_v53 = vld [vmem:[#allocation8 + $0x98] sm:$0xff] }
  0x4c   :  { %1259 = vmatprep.subr.mxu0 %v245_v26  ;;  %1232 = vmatprep.subr.mxu1 %v209_v27  ;;  %v181_v54 = vld [vmem:[#allocation2] sm:$0xff]  ;;  %v239_v57 = vld [vmem:[#allocation8 + $0x1b0] sm:$0xff]  ;;  %v238_v62 = vld [vmem:[#allocation8 + $0x1a8] sm:$0xff] }
  0x4d   :  { %1260 = vmatpush3.msra.mxu0 %v229_v28  ;;  %1233 = vmatpush3.msra.mxu1 %v193_v29  ;;  %v224_v55 = vld [vmem:[#allocation8 + $0x138] sm:$0xff]  ;;  %v203_v58 = vld [vmem:[#allocation8 + $0x90] sm:$0xff]  ;;  %v459_v61 = vrot.slane %v181_v54, %v1790_v51  ;;  %v202_v63 = vld [vmem:[#allocation8 + $0x88] sm:$0xff]  ;;  %v452_v7 = vcombine.high %v181_v54, %v181_v54 }
  0x4e   :  { %1261 = vmatprep.subr.mxu0 %v244_v33  ;;  %1234 = vmatprep.subr.mxu1 %v208_v34  ;;  %v188_v56 = vld [vmem:[#allocation8 + $0x18] sm:$0xff]  ;;  %v223_v59 = vld [vmem:[#allocation8 + $0x130] sm:$0xff]  ;;  %v222_v1 = vld [vmem:[#allocation8 + $0x128] sm:$0xff] }
  0x4f   :  { %1262 = vmatpush3.msra.mxu0 %v228_v35  ;;  %1235 = vmatpush3.msra.mxu1 %v192_v36  ;;  %v187_v60 = vld [vmem:[#allocation8 + $0x10] sm:$0xff]  ;;  %v186_v2 = vld [vmem:[#allocation8 + $0x8] sm:$0xff]  ;;  %v237_v3 = vld [vmem:[#allocation8 + $0x1a0] sm:$0xff]  ;;  %v467_v8 = vcombine.high %v459_v61, %v459_v61  ;;  %v466_v15 = vrot.slane %v452_v7, %v1790_v51 }
  0x50   :  { %1263 = vmatprep.subr.mxu0 %v243_v37  ;;  %1236 = vmatprep.subr.mxu1 %v207_v38  ;;  %v201_v4 = vld [vmem:[#allocation8 + $0x80] sm:$0xff]  ;;  %v236_v9 = vld [vmem:[#allocation8 + $0x198] sm:$0xff]  ;;  %v235_v12 = vld [vmem:[#allocation8 + $0x190] sm:$0xff] }
  0x51   :  { %1264 = vmatpush3.msra.mxu0 %v227_v39  ;;  %1237 = vmatpush3.msra.mxu1 %v191_v40  ;;  %v221_v5 = vld [vmem:[#allocation8 + $0x120] sm:$0xff]  ;;  %v220_v10 = vld [vmem:[#allocation8 + $0x118] sm:$0xff]  ;;  %v219_v14 = vld [vmem:[#allocation8 + $0x110] sm:$0xff]  ;;  %v468_v24 = vcombine.high %v466_v15, %v466_v15 }
  0x52   :  { %1265 = vmatprep.subr.mxu0 %v242_v43  ;;  %1238 = vmatprep.subr.mxu1 %v206_v44  ;;  %v185_v6 = vld [vmem:[#allocation8] sm:$0xff]  ;;  %v280_v11 = vld [vmem:[#allocation8 + $0x2f8] sm:$0xff]  ;;  %v279_v16 = vld [vmem:[#allocation8 + $0x2f0] sm:$0xff] }
  0x53   :  { %1266 = vmatpush3.msra.mxu0 %v226_v45  ;;  %1239 = vmatpush3.msra.mxu1 %v190_v46  ;;  %v264_v13 = vld [vmem:[#allocation8 + $0x278] sm:$0xff]  ;;  %v234_v17 = vld [vmem:[#allocation8 + $0x188] sm:$0xff]  ;;  %v263_v18 = vld [vmem:[#allocation8 + $0x270] sm:$0xff] }
  0x54   :  { %1267 = vmatprep.subr.mxu0 %v241_v47  ;;  %1240 = vmatprep.subr.mxu1 %v205_v48  ;;  %v218_v19 = vld [vmem:[#allocation8 + $0x108] sm:$0xff]  ;;  %v233_v21 = vld [vmem:[#allocation8 + $0x180] sm:$0xff]  ;;  %v312_v27 = vld [vmem:[#allocation8 + $0x3f8] sm:$0xff] }
  0x55   :  { %1268 = vmatpush3.msra.mxu0 %v225_v49  ;;  %1241 = vmatpush3.msra.mxu1 %v189_v50  ;;  %v278_v20 = vld [vmem:[#allocation8 + $0x2e8] sm:$0xff]  ;;  %v217_v23 = vld [vmem:[#allocation8 + $0x100] sm:$0xff]  ;;  %v276_v28 = vld [vmem:[#allocation8 + $0x2d8] sm:$0xff] }
  0x56   :  { %1269 = vmatprep.subr.mxu0 %v240_v52  ;;  %1242 = vmatprep.subr.mxu1 %v204_v53  ;;  %v262_v22 = vld [vmem:[#allocation8 + $0x268] sm:$0xff]  ;;  %v277_v25 = vld [vmem:[#allocation8 + $0x2e0] sm:$0xff]  ;;  %v296_v29 = vld [vmem:[#allocation8 + $0x378] sm:$0xff] }
  0x57   :  { %1270 = vmatpush3.msra.mxu0 %v224_v55  ;;  %1243 = vmatpush3.msra.mxu1 %v188_v56  ;;  %v261_v26 = vld [vmem:[#allocation8 + $0x260] sm:$0xff]  ;;  %v260_v30 = vld [vmem:[#allocation8 + $0x258] sm:$0xff]  ;;  %v311_v31 = vld [vmem:[#allocation8 + $0x3f0] sm:$0xff] }
  0x58   :  { %1271 = vmatprep.subr.mxu0 %v239_v57  ;;  %1244 = vmatprep.subr.mxu1 %v203_v58  ;;  %v275_v32 = vld [vmem:[#allocation8 + $0x2d0] sm:$0xff]  ;;  %v310_v35 = vld [vmem:[#allocation8 + $0x3e8] sm:$0xff]  ;;  %v309_v39 = vld [vmem:[#allocation8 + $0x3e0] sm:$0xff] }
  0x59   :  { %1272 = vmatpush3.msra.mxu0 %v223_v59  ;;  %1245 = vmatpush3.msra.mxu1 %v187_v60  ;;  %v295_v33 = vld [vmem:[#allocation8 + $0x370] sm:$0xff]  ;;  %v274_v36 = vld [vmem:[#allocation8 + $0x2c8] sm:$0xff]  ;;  %v273_v40 = vld [vmem:[#allocation8 + $0x2c0] sm:$0xff] }
  0x5a   :  { %1273 = vmatprep.subr.mxu0 %v238_v62  ;;  %1246 = vmatprep.subr.mxu1 %v202_v63  ;;  %v259_v34 = vld [vmem:[#allocation8 + $0x250] sm:$0xff]  ;;  %v294_v37 = vld [vmem:[#allocation8 + $0x368] sm:$0xff]  ;;  %v293_v41 = vld [vmem:[#allocation8 + $0x360] sm:$0xff] }
  0x5b   :  { %1274 = vmatpush3.msra.mxu0 %v222_v1  ;;  %1247 = vmatpush3.msra.mxu1 %v186_v2  ;;  %v258_v38 = vld [vmem:[#allocation8 + $0x248] sm:$0xff]  ;;  %v257_v42 = vld [vmem:[#allocation8 + $0x240] sm:$0xff]  ;;  %v308_v43 = vld [vmem:[#allocation8 + $0x3d8] sm:$0xff] }
  0x5c   :  { %1275 = vmatprep.subr.mxu0 %v237_v3  ;;  %1248 = vmatprep.subr.mxu1 %v201_v4  ;;  %v272_v44 = vld [vmem:[#allocation8 + $0x2b8] sm:$0xff]  ;;  %v307_v47 = vld [vmem:[#allocation8 + $0x3d0] sm:$0xff]  ;;  %v306_v52 = vld [vmem:[#allocation8 + $0x3c8] sm:$0xff] }
  0x5d   :  { %1276 = vmatpush3.msra.mxu0 %v221_v5  ;;  %1249 = vmatpush3.msra.mxu1 %v185_v6  ;;  %v292_v45 = vld [vmem:[#allocation8 + $0x358] sm:$0xff]  ;;  %v271_v48 = vld [vmem:[#allocation8 + $0x2b0] sm:$0xff]  ;;  %v270_v53 = vld [vmem:[#allocation8 + $0x2a8] sm:$0xff] }
  0x5e   :  { %1277 = vmatprep.subr.mxu0 %v236_v9  ;;  %600 = vmatprep.mubr.f32.mxu1 %v467_v8  ;;  %v256_v46 = vld [vmem:[#allocation8 + $0x238] sm:$0xff]  ;;  %v291_v49 = vld [vmem:[#allocation8 + $0x350] sm:$0xff]  ;;  %v290_v54 = vld [vmem:[#allocation8 + $0x348] sm:$0xff] }
  0x5f   :  { %1278 = vmatpush3.msra.mxu0 %v220_v10  ;;  %1288 = vmatprep.subr.mxu1 %v280_v11  ;;  %v255_v50 = vld [vmem:[#allocation8 + $0x230] sm:$0xff]  ;;  %v254_v55 = vld [vmem:[#allocation8 + $0x228] sm:$0xff]  ;;  %v305_v56 = vld [vmem:[#allocation8 + $0x3c0] sm:$0xff] }
  0x60   :  { %601 = vmatmul.mubr.f32.vlgmr.msra.gmra.mxu1 %v459_v61  ;;  %1279 = vmatprep.subr.mxu0 %v235_v12  ;;  %v269_v57 = vld [vmem:[#allocation8 + $0x2a0] sm:$0xff]  ;;  %v304_v60 = vld [vmem:[#allocation8 + $0x3b8] sm:$0xff]  ;;  %v303_v2 = vld [vmem:[#allocation8 + $0x3b0] sm:$0xff] }
  0x61   :  { %1289 = vmatpush3.msra.mxu1 %v264_v13  ;;  %1280 = vmatpush3.msra.mxu0 %v219_v14  ;;  %v289_v58 = vld [vmem:[#allocation8 + $0x340] sm:$0xff]  ;;  %v268_v61 = vld [vmem:[#allocation8 + $0x298] sm:$0xff]  ;;  %v267_v3 = vld [vmem:[#allocation8 + $0x290] sm:$0xff] }
  0x62   :  { %1290 = vmatprep.subr.mxu1 %v279_v16  ;;  %1281 = vmatprep.subr.mxu0 %v234_v17  ;;  %v253_v59 = vld [vmem:[#allocation8 + $0x220] sm:$0xff]  ;;  %v288_v63 = vld [vmem:[#allocation8 + $0x338] sm:$0xff]  ;;  %v287_v4 = vld [vmem:[#allocation8 + $0x330] sm:$0xff] }
  0x63   :  { %1291 = vmatpush3.msra.mxu1 %v263_v18  ;;  %1282 = vmatpush3.msra.mxu0 %v218_v19  ;;  %v182_v62 = vld [vmem:[#allocation2 + $0x8] sm:$0xff]  ;;  %v252_v1 = vld [vmem:[#allocation8 + $0x218] sm:$0xff]  ;;  %v251_v5 = vld [vmem:[#allocation8 + $0x210] sm:$0xff] }
  0x64   :  { %1292 = vmatprep.subr.mxu1 %v278_v20  ;;  %1283 = vmatprep.subr.mxu0 %v233_v21  ;;  %v476_v6 = vrot.slane %v182_v62, %v1790_v51  ;;  %v302_v7 = vld [vmem:[#allocation8 + $0x3a8] sm:$0xff]  ;;  %v301_v11 = vld [vmem:[#allocation8 + $0x3a0] sm:$0xff]  ;;  %v469_v16 = vcombine.high %v182_v62, %v182_v62  ;;  %v300_v17 = vld [vmem:[#allocation8 + $0x398] sm:$0xff] }
  0x65   :  { %1293 = vmatpush3.msra.mxu1 %v262_v22  ;;  %1284 = vmatpush3.msra.mxu0 %v217_v23  ;;  %v266_v8 = vld [vmem:[#allocation8 + $0x288] sm:$0xff]  ;;  %v265_v12 = vld [vmem:[#allocation8 + $0x280] sm:$0xff]  ;;  %v284_v18 = vld [vmem:[#allocation8 + $0x318] sm:$0xff] }
  0x66   :  { %670 = vmatprep.mubr.f32.mxu0 %v468_v24  ;;  %1294 = vmatprep.subr.mxu1 %v277_v25  ;;  %v286_v9 = vld [vmem:[#allocation8 + $0x328] sm:$0xff]  ;;  %v285_v13 = vld [vmem:[#allocation8 + $0x320] sm:$0xff]  ;;  %v344_v19 = vld [vmem:[#allocation8 + $0x4f8] sm:$0xff]  ;;  %v483_v23 = vrot.slane %v469_v16, %v1790_v51 }
  0x67   :  { %671 = vmatmul.mubr.f32.vlgmr.msra.gmra.mxu0 %v466_v15  ;;  %1295 = vmatpush3.msra.mxu1 %v261_v26  ;;  %v250_v10 = vld [vmem:[#allocation8 + $0x208] sm:$0xff]  ;;  %v249_v14 = vld [vmem:[#allocation8 + $0x200] sm:$0xff]  ;;  %v484_v15 = vcombine.high %v476_v6, %v476_v6  ;;  %v299_v20 = vld [vmem:[#allocation8 + $0x390] sm:$0xff] }
  0x68   :  { %1323 = vmatprep.subr.mxu0 %v312_v27  ;;  %1296 = vmatprep.subr.mxu1 %v276_v28  ;;  %v328_v21 = vld [vmem:[#allocation8 + $0x478] sm:$0xff]  ;;  %v283_v22 = vld [vmem:[#allocation8 + $0x310] sm:$0xff]  ;;  %v298_v25 = vld [vmem:[#allocation8 + $0x388] sm:$0xff] }
  0x69   :  { %1324 = vmatpush3.msra.mxu0 %v296_v29  ;;  %1297 = vmatpush3.msra.mxu1 %v260_v30  ;;  %v343_v24 = vld [vmem:[#allocation8 + $0x4f0] sm:$0xff]  ;;  %v282_v27 = vld [vmem:[#allocation8 + $0x308] sm:$0xff]  ;;  %v297_v29 = vld [vmem:[#allocation8 + $0x380] sm:$0xff] }
  0x6a   :  { %1325 = vmatprep.subr.mxu0 %v311_v31  ;;  %1298 = vmatprep.subr.mxu1 %v275_v32  ;;  %v327_v26 = vld [vmem:[#allocation8 + $0x470] sm:$0xff]  ;;  %v342_v28 = vld [vmem:[#allocation8 + $0x4e8] sm:$0xff]  ;;  %v281_v31 = vld [vmem:[#allocation8 + $0x300] sm:$0xff]  ;;  %v485_v32 = vcombine.high %v483_v23, %v483_v23 }
  0x6b   :  { %1326 = vmatpush3.msra.mxu0 %v295_v33  ;;  %1299 = vmatpush3.msra.mxu1 %v259_v34  ;;  %v326_v30 = vld [vmem:[#allocation8 + $0x468] sm:$0xff]  ;;  %v341_v33 = vld [vmem:[#allocation8 + $0x4e0] sm:$0xff] }
  0x6c   :  { %1327 = vmatprep.subr.mxu0 %v310_v35  ;;  %1300 = vmatprep.subr.mxu1 %v274_v36  ;;  %v325_v34 = vld [vmem:[#allocation8 + $0x460] sm:$0xff]  ;;  %v376_v35 = vld [vmem:[#allocation8 + $0x5f8] sm:$0xff]  ;;  %v354_v62 = vld [vmem:[#allocation8 + $0x548] sm:$0xff] }
  0x6d   :  { %1328 = vmatpush3.msra.mxu0 %v294_v37  ;;  %1301 = vmatpush3.msra.mxu1 %v258_v38  ;;  %v340_v36 = vld [vmem:[#allocation8 + $0x4d8] sm:$0xff]  ;;  %v330_v16 = vld [vmem:[#allocation8 + $0x488] sm:$0xff] }
  0x6e   :  { %1329 = vmatprep.subr.mxu0 %v309_v39  ;;  %1302 = vmatprep.subr.mxu1 %v273_v40  ;;  %v360_v37 = vld [vmem:[#allocation8 + $0x578] sm:$0xff]  ;;  %v375_v39 = vld [vmem:[#allocation8 + $0x5f0] sm:$0xff] }
  0x6f   :  { %1330 = vmatpush3.msra.mxu0 %v293_v41  ;;  %1303 = vmatpush3.msra.mxu1 %v257_v42  ;;  %v324_v38 = vld [vmem:[#allocation8 + $0x458] sm:$0xff]  ;;  %v339_v40 = vld [vmem:[#allocation8 + $0x4d0] sm:$0xff] }
  0x70   :  { %1331 = vmatprep.subr.mxu0 %v308_v43  ;;  %1304 = vmatprep.subr.mxu1 %v272_v44  ;;  %v359_v41 = vld [vmem:[#allocation8 + $0x570] sm:$0xff]  ;;  %v374_v43 = vld [vmem:[#allocation8 + $0x5e8] sm:$0xff] }
  0x71   :  { %1332 = vmatpush3.msra.mxu0 %v292_v45  ;;  %1305 = vmatpush3.msra.mxu1 %v256_v46  ;;  %v323_v42 = vld [vmem:[#allocation8 + $0x450] sm:$0xff]  ;;  %v338_v44 = vld [vmem:[#allocation8 + $0x4c8] sm:$0xff] }
  0x72   :  { %1333 = vmatprep.subr.mxu0 %v307_v47  ;;  %1306 = vmatprep.subr.mxu1 %v271_v48  ;;  %v358_v45 = vld [vmem:[#allocation8 + $0x568] sm:$0xff]  ;;  %v373_v47 = vld [vmem:[#allocation8 + $0x5e0] sm:$0xff] }
  0x73   :  { %1334 = vmatpush3.msra.mxu0 %v291_v49  ;;  %1307 = vmatpush3.msra.mxu1 %v255_v50  ;;  %v322_v46 = vld [vmem:[#allocation8 + $0x448] sm:$0xff]  ;;  %v337_v48 = vld [vmem:[#allocation8 + $0x4c0] sm:$0xff] }
  0x74   :  { %1335 = vmatprep.subr.mxu0 %v306_v52  ;;  %1308 = vmatprep.subr.mxu1 %v270_v53  ;;  %v357_v49 = vld [vmem:[#allocation8 + $0x560] sm:$0xff]  ;;  %v372_v52 = vld [vmem:[#allocation8 + $0x5d8] sm:$0xff] }
  0x75   :  { %1336 = vmatpush3.msra.mxu0 %v290_v54  ;;  %1309 = vmatpush3.msra.mxu1 %v254_v55  ;;  %v321_v50 = vld [vmem:[#allocation8 + $0x440] sm:$0xff]  ;;  %v336_v53 = vld [vmem:[#allocation8 + $0x4b8] sm:$0xff] }
  0x76   :  { %1337 = vmatprep.subr.mxu0 %v305_v56  ;;  %1310 = vmatprep.subr.mxu1 %v269_v57  ;;  %v356_v54 = vld [vmem:[#allocation8 + $0x558] sm:$0xff]  ;;  %v371_v56 = vld [vmem:[#allocation8 + $0x5d0] sm:$0xff] }
  0x77   :  { %1338 = vmatpush3.msra.mxu0 %v289_v58  ;;  %1311 = vmatpush3.msra.mxu1 %v253_v59  ;;  %v320_v55 = vld [vmem:[#allocation8 + $0x438] sm:$0xff]  ;;  %v335_v57 = vld [vmem:[#allocation8 + $0x4b0] sm:$0xff] }
  0x78   :  { %1339 = vmatprep.subr.mxu0 %v304_v60  ;;  %1312 = vmatprep.subr.mxu1 %v268_v61  ;;  %v355_v58 = vld [vmem:[#allocation8 + $0x550] sm:$0xff]  ;;  %v370_v60 = vld [vmem:[#allocation8 + $0x5c8] sm:$0xff] }
  0x79   :  { %1340 = vmatpush3.msra.mxu0 %v288_v63  ;;  %1313 = vmatpush3.msra.mxu1 %v252_v1  ;;  %v319_v59 = vld [vmem:[#allocation8 + $0x430] sm:$0xff]  ;;  %v334_v61 = vld [vmem:[#allocation8 + $0x4a8] sm:$0xff]  ;;  %v369_v1 = vld [vmem:[#allocation8 + $0x5c0] sm:$0xff] }
  0x7a   :  { %1341 = vmatprep.subr.mxu0 %v303_v2  ;;  %1314 = vmatprep.subr.mxu1 %v267_v3  ;;  %v318_v63 = vld [vmem:[#allocation8 + $0x428] sm:$0xff]  ;;  %v333_v2 = vld [vmem:[#allocation8 + $0x4a0] sm:$0xff] }
  0x7b   :  { %1342 = vmatpush3.msra.mxu0 %v287_v4  ;;  %1315 = vmatpush3.msra.mxu1 %v251_v5  ;;  %v353_v3 = vld [vmem:[#allocation8 + $0x540] sm:$0xff]  ;;  %v368_v5 = vld [vmem:[#allocation8 + $0x5b8] sm:$0xff] }
  0x7c   :  { %1343 = vmatprep.subr.mxu0 %v302_v7  ;;  %1316 = vmatprep.subr.mxu1 %v266_v8  ;;  %v317_v4 = vld [vmem:[#allocation8 + $0x420] sm:$0xff]  ;;  %v183_v7 = vld [vmem:[#allocation2 + $0x10] sm:$0xff]  ;;  %v352_v8 = vld [vmem:[#allocation8 + $0x538] sm:$0xff] }
  0x7d   :  { %1344 = vmatpush3.msra.mxu0 %v286_v9  ;;  %1317 = vmatpush3.msra.mxu1 %v250_v10  ;;  %v316_v9 = vld [vmem:[#allocation8 + $0x418] sm:$0xff]  ;;  %v367_v10 = vld [vmem:[#allocation8 + $0x5b0] sm:$0xff] }
  0x7e   :  { %1345 = vmatprep.subr.mxu0 %v301_v11  ;;  %1318 = vmatprep.subr.mxu1 %v265_v12  ;;  %v331_v11 = vld [vmem:[#allocation8 + $0x490] sm:$0xff] }
  0x7f   :  { %1346 = vmatpush3.msra.mxu0 %v285_v13  ;;  %1319 = vmatpush3.msra.mxu1 %v249_v14  ;;  %v351_v12 = vld [vmem:[#allocation8 + $0x530] sm:$0xff]  ;;  %v493_v14 = vrot.slane %v183_v7, %v1790_v51 }
  0x80   :  { %740 = vmatprep.mubr.f32.mxu1 %v484_v15  ;;  %1347 = vmatprep.subr.mxu0 %v300_v17  ;;  %v315_v13 = vld [vmem:[#allocation8 + $0x410] sm:$0xff]  ;;  %v366_v15 = vld [vmem:[#allocation8 + $0x5a8] sm:$0xff] }
  0x81   :  { %741 = vmatmul.mubr.f32.vlgmr.msra.gmra.mxu1 %v476_v6  ;;  %1348 = vmatpush3.msra.mxu0 %v284_v18  ;;  %v332_v6 = vld [vmem:[#allocation8 + $0x498] sm:$0xff]  ;;  %v350_v17 = vld [vmem:[#allocation8 + $0x528] sm:$0xff] }
  0x82   :  { %1358 = vmatprep.subr.mxu1 %v344_v19  ;;  %1349 = vmatprep.subr.mxu0 %v299_v20  ;;  %v314_v18 = vld [vmem:[#allocation8 + $0x408] sm:$0xff]  ;;  %v365_v19 = vld [vmem:[#allocation8 + $0x5a0] sm:$0xff] }
  0x83   :  { %1359 = vmatpush3.msra.mxu1 %v328_v21  ;;  %1350 = vmatpush3.msra.mxu0 %v283_v22  ;;  %v329_v20 = vld [vmem:[#allocation8 + $0x480] sm:$0xff] }
  0x84   :  { %1360 = vmatprep.subr.mxu1 %v343_v24  ;;  %1351 = vmatprep.subr.mxu0 %v298_v25  ;;  %v349_v21 = vld [vmem:[#allocation8 + $0x520] sm:$0xff]  ;;  %v486_v24 = vcombine.high %v183_v7, %v183_v7  ;;  %v364_v25 = vld [vmem:[#allocation8 + $0x598] sm:$0xff]  ;;  %v418_v7 = vld [vmem:[#allocation8 + $0x748] sm:$0xff] }
  0x85   :  { %1361 = vmatpush3.msra.mxu1 %v327_v26  ;;  %1352 = vmatpush3.msra.mxu0 %v282_v27  ;;  %v313_v22 = vld [vmem:[#allocation8 + $0x400] sm:$0xff]  ;;  %v348_v26 = vld [vmem:[#allocation8 + $0x518] sm:$0xff] }
  0x86   :  { %1362 = vmatprep.subr.mxu1 %v342_v28  ;;  %1353 = vmatprep.subr.mxu0 %v297_v29  ;;  %v408_v27 = vld [vmem:[#allocation8 + $0x6f8] sm:$0xff]  ;;  %v363_v28 = vld [vmem:[#allocation8 + $0x590] sm:$0xff] }
  0x87   :  { %1363 = vmatpush3.msra.mxu1 %v326_v30  ;;  %1354 = vmatpush3.msra.mxu0 %v281_v31  ;;  %v392_v29 = vld [vmem:[#allocation8 + $0x678] sm:$0xff]  ;;  %v347_v30 = vld [vmem:[#allocation8 + $0x510] sm:$0xff]  ;;  %v500_v31 = vrot.slane %v486_v24, %v1790_v51  ;;  %v430_v24 = vld [vmem:[#allocation8 + $0x7a8] sm:$0xff] }
  0x88   :  { %810 = vmatprep.mubr.f32.mxu0 %v485_v32  ;;  %1364 = vmatprep.subr.mxu1 %v341_v33  ;;  %v407_v32 = vld [vmem:[#allocation8 + $0x6f0] sm:$0xff]  ;;  %v362_v33 = vld [vmem:[#allocation8 + $0x588] sm:$0xff] }
  0x89   :  { %811 = vmatmul.mubr.f32.vlgmr.msra.gmra.mxu0 %v483_v23  ;;  %1365 = vmatpush3.msra.mxu1 %v325_v34  ;;  %v501_v23 = vcombine.high %v493_v14, %v493_v14  ;;  %v391_v34 = vld [vmem:[#allocation8 + $0x670] sm:$0xff] }
  0x8a   :  { %1393 = vmatprep.subr.mxu0 %v376_v35  ;;  %1366 = vmatprep.subr.mxu1 %v340_v36  ;;  %v346_v35 = vld [vmem:[#allocation8 + $0x508] sm:$0xff] }
  0x8b   :  { %1394 = vmatpush3.msra.mxu0 %v360_v37  ;;  %1367 = vmatpush3.msra.mxu1 %v324_v38  ;;  %v406_v36 = vld [vmem:[#allocation8 + $0x6e8] sm:$0xff]  ;;  %v361_v37 = vld [vmem:[#allocation8 + $0x580] sm:$0xff] }
  0x8c   :  { %1395 = vmatprep.subr.mxu0 %v375_v39  ;;  %1368 = vmatprep.subr.mxu1 %v339_v40  ;;  %v390_v38 = vld [vmem:[#allocation8 + $0x668] sm:$0xff]  ;;  %v345_v39 = vld [vmem:[#allocation8 + $0x500] sm:$0xff]  ;;  %v502_v40 = vcombine.high %v500_v31, %v500_v31 }
  0x8d   :  { %1396 = vmatpush3.msra.mxu0 %v359_v41  ;;  %1369 = vmatpush3.msra.mxu1 %v323_v42  ;;  %v405_v41 = vld [vmem:[#allocation8 + $0x6e0] sm:$0xff] }
  0x8e   :  { %1397 = vmatprep.subr.mxu0 %v374_v43  ;;  %1370 = vmatprep.subr.mxu1 %v338_v44  ;;  %v389_v42 = vld [vmem:[#allocation8 + $0x660] sm:$0xff]  ;;  %v440_v43 = vld [vmem:[#allocation8 + $0x7f8] sm:$0xff] }
  0x8f   :  { %1398 = vmatpush3.msra.mxu0 %v358_v45  ;;  %1371 = vmatpush3.msra.mxu1 %v322_v46  ;;  %v404_v44 = vld [vmem:[#allocation8 + $0x6d8] sm:$0xff] }
  0x90   :  { %1399 = vmatprep.subr.mxu0 %v373_v47  ;;  %1372 = vmatprep.subr.mxu1 %v337_v48  ;;  %v424_v45 = vld [vmem:[#allocation8 + $0x778] sm:$0xff]  ;;  %v439_v47 = vld [vmem:[#allocation8 + $0x7f0] sm:$0xff] }
  0x91   :  { %1400 = vmatpush3.msra.mxu0 %v357_v49  ;;  %1373 = vmatpush3.msra.mxu1 %v321_v50  ;;  %v388_v46 = vld [vmem:[#allocation8 + $0x658] sm:$0xff]  ;;  %v403_v48 = vld [vmem:[#allocation8 + $0x6d0] sm:$0xff] }
  0x92   :  { %1401 = vmatprep.subr.mxu0 %v372_v52  ;;  %1374 = vmatprep.subr.mxu1 %v336_v53  ;;  %v423_v49 = vld [vmem:[#allocation8 + $0x770] sm:$0xff]  ;;  %v438_v52 = vld [vmem:[#allocation8 + $0x7e8] sm:$0xff] }
  0x93   :  { %1402 = vmatpush3.msra.mxu0 %v356_v54  ;;  %1375 = vmatpush3.msra.mxu1 %v320_v55  ;;  %v387_v50 = vld [vmem:[#allocation8 + $0x650] sm:$0xff]  ;;  %v402_v53 = vld [vmem:[#allocation8 + $0x6c8] sm:$0xff] }
  0x94   :  { %1403 = vmatprep.subr.mxu0 %v371_v56  ;;  %1376 = vmatprep.subr.mxu1 %v335_v57  ;;  %v422_v54 = vld [vmem:[#allocation8 + $0x768] sm:$0xff]  ;;  %v437_v56 = vld [vmem:[#allocation8 + $0x7e0] sm:$0xff] }
  0x95   :  { %1404 = vmatpush3.msra.mxu0 %v355_v58  ;;  %1377 = vmatpush3.msra.mxu1 %v319_v59  ;;  %v386_v55 = vld [vmem:[#allocation8 + $0x648] sm:$0xff]  ;;  %v401_v57 = vld [vmem:[#allocation8 + $0x6c0] sm:$0xff] }
  0x96   :  { %1405 = vmatprep.subr.mxu0 %v370_v60  ;;  %1378 = vmatprep.subr.mxu1 %v334_v61  ;;  %v421_v58 = vld [vmem:[#allocation8 + $0x760] sm:$0xff]  ;;  %v436_v60 = vld [vmem:[#allocation8 + $0x7d8] sm:$0xff] }
  0x97   :  { %1406 = vmatpush3.msra.mxu0 %v354_v62  ;;  %1379 = vmatpush3.msra.mxu1 %v318_v63  ;;  %v385_v59 = vld [vmem:[#allocation8 + $0x640] sm:$0xff]  ;;  %v400_v61 = vld [vmem:[#allocation8 + $0x6b8] sm:$0xff] }
  0x98   :  { %1407 = vmatprep.subr.mxu0 %v369_v1  ;;  %1380 = vmatprep.subr.mxu1 %v333_v2  ;;  %v420_v62 = vld [vmem:[#allocation8 + $0x758] sm:$0xff]  ;;  %v435_v1 = vld [vmem:[#allocation8 + $0x7d0] sm:$0xff] }
  0x99   :  { %1408 = vmatpush3.msra.mxu0 %v353_v3  ;;  %1381 = vmatpush3.msra.mxu1 %v317_v4  ;;  %v384_v63 = vld [vmem:[#allocation8 + $0x638] sm:$0xff]  ;;  %v399_v2 = vld [vmem:[#allocation8 + $0x6b0] sm:$0xff] }
  0x9a   :  { %1409 = vmatprep.subr.mxu0 %v368_v5  ;;  %1382 = vmatprep.subr.mxu1 %v332_v6  ;;  %v419_v3 = vld [vmem:[#allocation8 + $0x750] sm:$0xff]  ;;  %v434_v5 = vld [vmem:[#allocation8 + $0x7c8] sm:$0xff] }
  0x9b   :  { %1410 = vmatpush3.msra.mxu0 %v352_v8  ;;  %1383 = vmatpush3.msra.mxu1 %v316_v9  ;;  %v383_v4 = vld [vmem:[#allocation8 + $0x630] sm:$0xff]  ;;  %v398_v6 = vld [vmem:[#allocation8 + $0x6a8] sm:$0xff]  ;;  %v433_v9 = vld [vmem:[#allocation8 + $0x7c0] sm:$0xff] }
  0x9c   :  { %1411 = vmatprep.subr.mxu0 %v367_v10  ;;  %1384 = vmatprep.subr.mxu1 %v331_v11  ;;  %v382_v8 = vld [vmem:[#allocation8 + $0x628] sm:$0xff]  ;;  %v397_v10 = vld [vmem:[#allocation8 + $0x6a0] sm:$0xff] }
  0x9d   :  { %1412 = vmatpush3.msra.mxu0 %v351_v12  ;;  %1385 = vmatpush3.msra.mxu1 %v315_v13  ;;  %v417_v11 = vld [vmem:[#allocation8 + $0x740] sm:$0xff]  ;;  %v432_v13 = vld [vmem:[#allocation8 + $0x7b8] sm:$0xff] }
  0x9e   :  { %1413 = vmatprep.subr.mxu0 %v366_v15  ;;  %1386 = vmatprep.subr.mxu1 %v330_v16  ;;  %v381_v12 = vld [vmem:[#allocation8 + $0x620] sm:$0xff]  ;;  %v184_v15 = vld [vmem:[#allocation2 + $0x18] sm:$0xff] }
  0x9f   :  { %1414 = vmatpush3.msra.mxu0 %v350_v17  ;;  %1387 = vmatpush3.msra.mxu1 %v314_v18  ;;  %v416_v16 = vld [vmem:[#allocation8 + $0x738] sm:$0xff]  ;;  %v503_v18 = vcombine.high %v184_v15, %v184_v15 }
  0xa0   :  { %1415 = vmatprep.subr.mxu0 %v365_v19  ;;  %1388 = vmatprep.subr.mxu1 %v329_v20  ;;  %v380_v17 = vld [vmem:[#allocation8 + $0x618] sm:$0xff]  ;;  %v431_v19 = vld [vmem:[#allocation8 + $0x7b0] sm:$0xff] }
  0xa1   :  { %1416 = vmatpush3.msra.mxu0 %v349_v21  ;;  %1389 = vmatpush3.msra.mxu1 %v313_v22  ;;  %v395_v20 = vld [vmem:[#allocation8 + $0x690] sm:$0xff] }
  0xa2   :  { %880 = vmatprep.mubr.f32.mxu1 %v501_v23  ;;  %1417 = vmatprep.subr.mxu0 %v364_v25  ;;  %v415_v21 = vld [vmem:[#allocation8 + $0x730] sm:$0xff]  ;;  %v510_v23 = vrot.slane %v184_v15, %v1790_v51  ;;  %v394_v25 = vld [vmem:[#allocation8 + $0x688] sm:$0xff] }
  0xa3   :  { %881 = vmatmul.mubr.f32.vlgmr.msra.gmra.mxu1 %v493_v14  ;;  %1418 = vmatpush3.msra.mxu0 %v348_v26  ;;  %v396_v14 = vld [vmem:[#allocation8 + $0x698] sm:$0xff]  ;;  %v379_v22 = vld [vmem:[#allocation8 + $0x610] sm:$0xff]  ;;  %v414_v26 = vld [vmem:[#allocation8 + $0x728] sm:$0xff] }
  0xa4   :  { %1428 = vmatprep.subr.mxu1 %v408_v27  ;;  %1419 = vmatprep.subr.mxu0 %v363_v28  ;;  %v378_v27 = vld [vmem:[#allocation8 + $0x608] sm:$0xff]  ;;  %v517_v28 = vrot.slane %v503_v18, %v1790_v51  ;;  %v411_v51 = vld [vmem:[#allocation8 + $0x710] sm:$0xff] }
  0xa5   :  { %1429 = vmatpush3.msra.mxu1 %v392_v29  ;;  %1420 = vmatpush3.msra.mxu0 %v347_v30  ;;  %v429_v29 = vld [vmem:[#allocation8 + $0x7a0] sm:$0xff] }
  0xa6   :  { %1430 = vmatprep.subr.mxu1 %v407_v32  ;;  %1421 = vmatprep.subr.mxu0 %v362_v33  ;;  %v393_v30 = vld [vmem:[#allocation8 + $0x680] sm:$0xff]  ;;  %v518_v33 = vcombine.high %v510_v23, %v510_v23 }
  0xa7   :  { %1431 = vmatpush3.msra.mxu1 %v391_v34  ;;  %1422 = vmatpush3.msra.mxu0 %v346_v35  ;;  %v377_v32 = vld [vmem:[#allocation8 + $0x600] sm:$0xff]  ;;  %v428_v34 = vld [vmem:[#allocation8 + $0x798] sm:$0xff] }
  0xa8   :  { %1432 = vmatprep.subr.mxu1 %v406_v36  ;;  %1423 = vmatprep.subr.mxu0 %v361_v37  ;;  %v412_v35 = vld [vmem:[#allocation8 + $0x718] sm:$0xff]  ;;  %v519_v36 = vcombine.high %v517_v28, %v517_v28  ;;  %v427_v37 = vld [vmem:[#allocation8 + $0x790] sm:$0xff] }
  0xa9   :  { %1433 = vmatpush3.msra.mxu1 %v390_v38  ;;  %1424 = vmatpush3.msra.mxu0 %v345_v39  ;;  %v426_v38 = vld [vmem:[#allocation8 + $0x788] sm:$0xff] }
  0xaa   :  { %950 = vmatprep.mubr.f32.mxu0 %v502_v40  ;;  %1434 = vmatprep.subr.mxu1 %v405_v41  ;;  %v410_v39 = vld [vmem:[#allocation8 + $0x708] sm:$0xff]  ;;  %v425_v40 = vld [vmem:[#allocation8 + $0x780] sm:$0xff] }
  0xab   :  { %951 = vmatmul.mubr.f32.vlgmr.msra.gmra.mxu0 %v500_v31  ;;  %1435 = vmatpush3.msra.mxu1 %v389_v42  ;;  %v413_v31 = vld [vmem:[#allocation8 + $0x720] sm:$0xff]  ;;  %v1113_v42 = vld [vmem:[#allocation10 + $0x78] sm:$0xff] }
  0xac   :  { %1463 = vmatprep.subr.mxu0 %v440_v43  ;;  %1436 = vmatprep.subr.mxu1 %v404_v44  ;;  %v409_v41 = vld [vmem:[#allocation8 + $0x700] sm:$0xff]  ;;  %v1112_v43 = vld [vmem:[#allocation10 + $0x70] sm:$0xff]  ;;  %v1111_v44 = vld [vmem:[#allocation10 + $0x68] sm:$0xff] }
  0xad   :  { %1464 = vmatpush3.msra.mxu0 %v424_v45  ;;  %1437 = vmatpush3.msra.mxu1 %v388_v46  ;;  %v1110_v45 = vld [vmem:[#allocation10 + $0x60] sm:$0xff]  ;;  %v1109_v46 = vld [vmem:[#allocation10 + $0x58] sm:$0xff] }
  0xae   :  { %1465 = vmatprep.subr.mxu0 %v439_v47  ;;  %1438 = vmatprep.subr.mxu1 %v403_v48  ;;  %v1108_v47 = vld [vmem:[#allocation10 + $0x50] sm:$0xff]  ;;  %v1107_v48 = vld [vmem:[#allocation10 + $0x48] sm:$0xff] }
  0xaf   :  { %1466 = vmatpush3.msra.mxu0 %v423_v49  ;;  %1439 = vmatpush3.msra.mxu1 %v387_v50  ;;  %v1106_v50 = vld [vmem:[#allocation10 + $0x40] sm:$0xff] }
  0xb0   :  { %1467 = vmatprep.subr.mxu0 %v438_v52  ;;  %1440 = vmatprep.subr.mxu1 %v402_v53  ;;  %v1105_v53 = vld [vmem:[#allocation10 + $0x38] sm:$0xff] }
  0xb1   :  { %1468 = vmatpush3.msra.mxu0 %v422_v54  ;;  %1441 = vmatpush3.msra.mxu1 %v386_v55  ;;  %v1104_v54 = vld [vmem:[#allocation10 + $0x30] sm:$0xff]  ;;  %v1103_v55 = vld [vmem:[#allocation10 + $0x28] sm:$0xff] }
  0xb2   :  { %1469 = vmatprep.subr.mxu0 %v437_v56  ;;  %1442 = vmatprep.subr.mxu1 %v401_v57  ;;  %v1102_v56 = vld [vmem:[#allocation10 + $0x20] sm:$0xff]  ;;  %v1101_v57 = vld [vmem:[#allocation10 + $0x18] sm:$0xff] }
  0xb3   :  { %1470 = vmatpush3.msra.mxu0 %v421_v58  ;;  %1443 = vmatpush3.msra.mxu1 %v385_v59  ;;  %v1100_v58 = vld [vmem:[#allocation10 + $0x10] sm:$0xff]  ;;  %v1099_v59 = vld [vmem:[#allocation10 + $0x8] sm:$0xff] }
  0xb4   :  { %1471 = vmatprep.subr.mxu0 %v436_v60  ;;  %1444 = vmatprep.subr.mxu1 %v400_v61  ;;  %v1098_v60 = vld [vmem:[#allocation10] sm:$0xff] }
  0xb5   :  { %1472 = vmatpush3.msra.mxu0 %v420_v62  ;;  %1445 = vmatpush3.msra.mxu1 %v384_v63 }
  0xb6   :  { %1473 = vmatprep.subr.mxu0 %v435_v1  ;;  %1446 = vmatprep.subr.mxu1 %v399_v2 }
  0xb7   :  { %1474 = vmatpush3.msra.mxu0 %v419_v3  ;;  %1447 = vmatpush3.msra.mxu1 %v383_v4 }
  0xb8   :  { %1475 = vmatprep.subr.mxu0 %v434_v5  ;;  %1448 = vmatprep.subr.mxu1 %v398_v6  ;;  %v1211_v6 = vld [vmem:[%s1835_s5] ss:$0 sm:$0xff] }
  0xb9   :  { %1476 = vmatpush3.msra.mxu0 %v418_v7  ;;  %1449 = vmatpush3.msra.mxu1 %v382_v8 }
  0xba   :  { %1477 = vmatprep.subr.mxu0 %v433_v9  ;;  %1450 = vmatprep.subr.mxu1 %v397_v10 }
  0xbb   :  { %1478 = vmatpush3.msra.mxu0 %v417_v11  ;;  %1451 = vmatpush3.msra.mxu1 %v381_v12 }
  0xbc   :  { %1479 = vmatprep.subr.mxu0 %v432_v13  ;;  %1452 = vmatprep.subr.mxu1 %v396_v14 }
  0xbd   :  { %1480 = vmatpush3.msra.mxu0 %v416_v16  ;;  %1453 = vmatpush3.msra.mxu1 %v380_v17 }
  0xbe   :  { %1481 = vmatprep.subr.mxu0 %v431_v19  ;;  %1454 = vmatprep.subr.mxu1 %v395_v20 }
  0xbf   :  { %1482 = vmatpush3.msra.mxu0 %v415_v21  ;;  %1455 = vmatpush3.msra.mxu1 %v379_v22 }
  0xc0   :  { %1483 = vmatprep.subr.mxu0 %v430_v24  ;;  %1456 = vmatprep.subr.mxu1 %v394_v25  ;;  %v1209_v24 = vld [vmem:[%s1833_s3] ss:$0 sm:$0xff]  ;;  %s1676_s3 = scalar_lea.vmem %s1199_s11, 32 }
  0xc1   :  { %1484 = vmatpush3.msra.mxu0 %v414_v26  ;;  %1457 = vmatpush3.msra.mxu1 %v378_v27  ;;  %p1677_p11 = scmp.ne.s32.totalorder %s1199_s11, %s1676_s3  ;;  %p1682_p13 = scmp.lt.s32.totalorder %s1676_s3, %s1676_s3 }
  0xc2   :  { %1485 = vmatprep.subr.mxu0 %v429_v29  ;;  %1458 = vmatprep.subr.mxu1 %v393_v30 }
  0xc3   :  { %1486 = vmatpush3.msra.mxu0 %v413_v31  ;;  %1459 = vmatpush3.msra.mxu1 %v377_v32  ;;  %p1683_p0 = por %p1682_p13, %p1681_p12 }
  0xc4   :  { %1020 = vmatprep.mubr.f32.mxu1 %v518_v33  ;;  %1487 = vmatprep.subr.mxu0 %v428_v34 }
  0xc5   :  { %1021 = vmatmul.mubr.f32.vlgmr.msra.gmra.mxu1 %v510_v23  ;;  %1488 = vmatpush3.msra.mxu0 %v412_v35  ;;  %v1212_v35 = vld [vmem:[%s1837_s7] ss:$0 sm:$0xff]  ;;  %p1684_p1 = pnand %p1683_p0, %p1677_p11 }
  0xc6   :  { %1489 = vmatprep.subr.mxu0 %v427_v37  ;;  %1090 = vmatprep.mubr.f32.mxu0 %v519_v36 }
  0xc7   :  { %1490 = vmatpush3.msra.mxu0 %v411_v51  ;;  %1526 = vmatprep.subr.mxu1 %v1711_v0 }
  0xc8   :  { %1491 = vmatprep.subr.mxu0 %v426_v38  ;;  %1558 = vmatprep.mubr.msk.f32.mxu1 %vm1712_vm0, %v1711_v0 }
  0xc9   :  { %1492 = vmatpush3.msra.mxu0 %v410_v39  ;;  %1527 = vmatpush3.msra.mxu1 %v1113_v42 }
  0xca   :  { %1493 = vmatprep.subr.mxu0 %v425_v40  ;;  %1528 = vmatprep.subr.mxu1 %v1711_v0 }
  0xcb   :  { %1494 = vmatpush3.msra.mxu0 %v409_v41  ;;  %1529 = vmatpush3.msra.mxu1 %v1112_v43 }
  0xcc   :  { %1091 = vmatmul.mubr.f32.vlgmr.msra.gmra.mxu0 %v517_v28  ;;  %1530 = vmatprep.subr.mxu1 %v1711_v0 }
  0xcd   :  { %1531 = vmatpush3.msra.mxu1 %v1111_v44 }
  0xce   :  { %1532 = vmatprep.subr.mxu1 %v1711_v0 }
  0xcf   :  { %1533 = vmatpush3.msra.mxu1 %v1110_v45 }
  0xd0   :  { %1534 = vmatprep.subr.mxu1 %v1711_v0 }
  0xd1   :  { %1535 = vmatpush3.msra.mxu1 %v1109_v46 }
  0xd2   :  { %1536 = vmatprep.subr.mxu1 %v1711_v0 }
  0xd3   :  { %1537 = vmatpush3.msra.mxu1 %v1108_v47 }
  0xd4   :  { %1538 = vmatprep.subr.mxu1 %v1711_v0 }
  0xd5   :  { %1539 = vmatpush3.msra.mxu1 %v1107_v48 }
  0xd6   :  { %1540 = vmatprep.subr.mxu1 %v1711_v0 }
  0xd7   :  { %1541 = vmatpush3.msra.mxu1 %v1106_v50 }
  0xd8   :  { %1542 = vmatprep.subr.mxu1 %v1711_v0 }
  0xd9   :  { %1543 = vmatpush3.msra.mxu1 %v1105_v53 }
  0xda   :  { %1544 = vmatprep.subr.mxu1 %v1711_v0 }
  0xdb   :  { %1545 = vmatpush3.msra.mxu1 %v1104_v54 }
  0xdc   :  { %1546 = vmatprep.subr.mxu1 %v1711_v0 }
  0xdd   :  { %1547 = vmatpush3.msra.mxu1 %v1103_v55 }
  0xde   :  { %1548 = vmatprep.subr.mxu1 %v1711_v0 }
  0xdf   :  { %1549 = vmatpush3.msra.mxu1 %v1102_v56 }
  0xe0   :  { %1550 = vmatprep.subr.mxu1 %v1711_v0 }
  0xe1   :  { %1551 = vmatpush3.msra.mxu1 %v1101_v57 }
  0xe2   :  { %1552 = vmatprep.subr.mxu1 %v1711_v0 }
  0xe3   :  { %1553 = vmatpush3.msra.mxu1 %v1100_v58 }
  0xe4   :  { %1554 = vmatprep.subr.mxu1 %v1711_v0 }
  0xe5   :  { %1555 = vmatpush3.msra.mxu1 %v1099_v59 }
  0xe6   :  { %1556 = vmatprep.subr.mxu1 %v1711_v0 }
  0xe7   :  { %1557 = vmatpush3.msra.mxu1 %v1098_v60 }
 0x105   :  { %v176_v49 = vpop.f32.mrf.mxu0 }
 0x106   :  { %v177_v28 = vadd.f32 %v1209_v24, %v176_v49 }
 0x107   :  { %v1525_v52 = vpop.f32.mrf.mxu0 }
 0x108   :  { %v180_v32 = vmax.f32 %v177_v28, 0.0 }
 0x120   :  { %v1250_v61 = vpop.f32.mrf.mxu1 }
 0x122   :  { %v1251_v63 = vpop.f32.mrf.mxu1 }
 0x123   :  { %v1252_v4 = vadd.f32 %v1251_v63, %v1250_v61 }
 0x125   :  { %v603_v9 = vadd.f32 %v1252_v4, %v1211_v6 }
 0x127   :  { %v1285_v62 = vpop.f32.mrf.mxu0 }
 0x129   :  { %v1286_v2 = vpop.f32.mrf.mxu0 }
 0x12a   :  { %v1287_v10 = vadd.f32 %v1286_v2, %v1285_v62 }
 0x12c   :  { %v673_v13 = vadd.f32 %v1287_v10, %v603_v9 }
 0x141   :  { %v1320_v1 = vpop.f32.mrf.mxu1 }
 0x143   :  { %v1321_v5 = vpop.f32.mrf.mxu1 }
 0x144   :  { %v1322_v0 = vadd.f32 %v1321_v5, %v1320_v1 }
 0x146   :  { %v743_v17 = vadd.f32 %v1322_v0, %v673_v13 }
 0x149   :  { %v1355_v3 = vpop.f32.mrf.mxu0 }
 0x14b   :  { %v1356_v8 = vpop.f32.mrf.mxu0 }
 0x14c   :  { %v1357_v14 = vadd.f32 %v1356_v8, %v1355_v3 }
 0x14e   :  { %v813_v20 = vadd.f32 %v1357_v14, %v743_v17 }
 0x163   :  { %v1390_v7 = vpop.f32.mrf.mxu1 }
 0x165   :  { %v1391_v12 = vpop.f32.mrf.mxu1 }
 0x166   :  { %v1392_v18 = vadd.f32 %v1391_v12, %v1390_v7 }
 0x168   :  { %v883_v22 = vadd.f32 %v1392_v18, %v813_v20 }
 0x16b   :  { %v1425_v11 = vpop.f32.mrf.mxu0 }
 0x16d   :  { %v1426_v16 = vpop.f32.mrf.mxu0 }
 0x16e   :  { %v1427_v21 = vadd.f32 %v1426_v16, %v1425_v11 }
 0x170   :  { %v953_v26 = vadd.f32 %v1427_v21, %v883_v22 }
 0x185   :  { %v1460_v15 = vpop.f32.mrf.mxu1 }
 0x187   :  { %v1461_v19 = vpop.f32.mrf.mxu1 }
 0x188   :  { %v1462_v23 = vadd.f32 %v1461_v19, %v1460_v15 }
 0x18a   :  { %v1023_v29 = vadd.f32 %v1462_v23, %v953_v26 }
 0x18c   :  { %v1495_v25 = vpop.f32.mrf.mxu0 }
 0x18e   :  { %v1496_v27 = vpop.f32.mrf.mxu0 }
 0x18f   :  { %v1497_v30 = vadd.f32 %v1496_v27, %v1495_v25 }
 0x191   :  { %v1093_v31 = vadd.f32 %v1497_v30, %v1023_v29 }
 0x193   :  { %v1096_v33 = vmax.f32 %v1093_v31, 0.0 }
 0x195   :  { %v1097_v34 = vmul.f32 %v1096_v33, %v180_v32 }
 0x197   :  { %1559 = vmatmul.mubr.f32.vlgmr.msra.gmra.mxu1 %v1097_v34 }
 0x257   :  { %v1187_v36 = vpop.f32.mrf.mxu1 }
 0x258   :  { %v1188_v37 = vadd.f32 %v1212_v35, %v1187_v36 }
 0x259   :  { %v1560_v51 = vpop.f32.mrf.mxu1 }
 0x25a   :  { %1191 = vst [vmem:[#allocation11] sm:$0x3] %v1188_v37 }
 0x25b   :  { %1687 = shalt.err (!%p1684_p1)
}
 0x25c   :  { %1201 = dma.vmem_to_hbm [thread:$0]  %s1199_s11, 32, %s1838_s8, [#allocation4]  }
 0x25d   :  { %1702 = dma.done.wait [#allocation4], 32  }
 0x25e   :  { %1703 = vsyncadd [#allocation4], 4294967264 }
 0x25f   :  { %1205 = vsyncpa [#allocation3], 1 }
 0x260   :  { %1206 = vsyncpa [#allocation6], 1 }
 0x261   :  { %1207 = vsyncpa [#allocation9], 1 }
 0x262   :  { %1208 = vsyncpa [#allocation4], 1 }

</bundles_post_ra>
